<compile_context>
chip_gen: v5e
topology: v5e:2x2
jax: 0.10.0
libtpu: 0.0.40
codegen_flags: <defaults>
</compile_context>

<pallas_src>
import functools

import jax
import jax.numpy as jnp
from jax.experimental import pallas as pl
from jax.experimental.pallas import tpu as pltpu

_LANES = 128
_MAX_BLOCK_ROWS = 32768          # upper bound on rows per input block
_VMEM_FALLBACK = 64 << 20        # v7x physical VMEM (smallest gen) if query fails


def _mse_partial_kernel(p_ref, t_ref, o_ref, *, valid_rows, block_rows, needs_mask):
    """Write this block's partial sum of (p - t)^2 as a lane-dense (1, 1, 128) tile."""
    d = p_ref[...].astype(jnp.float32) - t_ref[...].astype(jnp.float32)
    sq = d * d

    if needs_mask:
        i = pl.program_id(0)
        last = pl.num_programs(0) - 1

        # Fast path: all full blocks skip the mask entirely (DMA roofline).
        @pl.when(i != last)
        def _():
            o_ref[...] = jnp.sum(sq, axis=0, keepdims=True).reshape(1, 1, _LANES)

        # Slow path: only the partial last block pays for iota+cmp+select; rows
        # at/after `valid_rows` hold unspecified VMEM data and are zeroed.
        @pl.when(i == last)
        def _():
            row_ids = jax.lax.broadcasted_iota(jnp.int32, sq.shape, 0) + i * block_rows
            masked = jnp.where(row_ids < valid_rows, sq, jnp.float32(0.0))
            o_ref[...] = jnp.sum(masked, axis=0, keepdims=True).reshape(1, 1, _LANES)
    else:
        o_ref[...] = jnp.sum(sq, axis=0, keepdims=True).reshape(1, 1, _LANES)


def _vmem_capacity_bytes():
    try:
        info = pltpu.get_tpu_info()
        return int(getattr(info, "vmem_capacity_bytes", _VMEM_FALLBACK))
    except Exception:
        return _VMEM_FALLBACK


def _dimension_semantics(num_blocks):
    # Only CORE_PARALLEL actually shards the block loop across v7x's two
    # TensorCores (plain "parallel" has near-zero codegen impact).  The output
    # blocks are independent per grid step, so the split is safe; we opt in
    # only on v7x-looking devices and even grids, keeping "parallel" as the
    # known-good default on v5e/v6e.
    try:
        kind = jax.devices()[0].device_kind.lower()
    except Exception:
        kind = ""
    if ("v7" in kind or "7x" in kind) and num_blocks >= 2 and num_blocks % 2 == 0:
        return (pltpu.CORE_PARALLEL,)
    return ("parallel",)


def mse_loss(preds, target, *, block_rows=None):
    """Mean squared error over all elements, matching nn.MSELoss() defaults."""
    assert preds.shape == target.shape, "preds/target must have identical shapes"
    n = preds.size

    itemsize_p = jnp.dtype(preds.dtype).itemsize
    itemsize_t = jnp.dtype(target.dtype).itemsize
    # Packed-sublane multiple: 8 rows for 32-bit, 16 for 16-bit, 32 for 8-bit.
    sub_mult = max(8, 32 // max(1, min(itemsize_p, itemsize_t)))

    rem = n % _LANES
    n_main = n - rem

    # The <128-element tail is reduced with plain jnp in the wrapper instead of
    # jnp.pad-ing both full arrays (which doubled HBM traffic on this path).
    if rem:
        p_flat = preds.reshape(-1)
        t_flat = target.reshape(-1)
        td = p_flat[n_main:].astype(jnp.float32) - t_flat[n_main:].astype(jnp.float32)
        tail_sum = jnp.sum(td * td, dtype=jnp.float32)
        p_main = p_flat[:n_main]
        t_main = t_flat[:n_main]
    else:
        tail_sum = jnp.float32(0.0)
        p_main = preds
        t_main = target

    if n_main == 0:
        # Whole input fits in the tail (numel < 128): no kernel needed.
        return tail_sum / jnp.float32(n)

    rows = n_main // _LANES
    p2d = p_main.reshape(rows, _LANES)
    t2d = t_main.reshape(rows, _LANES)

    vmem_cap = _vmem_capacity_bytes()

    # Generation-aware block sizing: fill ~1/3 of physical VMEM (capped at
    # 40 MiB) with the two double-buffered input streams.
    if block_rows is None:
        budget = min(vmem_cap // 3, 40 << 20)
        per_row_pipelined = 2 * _LANES * (itemsize_p + itemsize_t)  # 2 bufs x 2 inputs
        block_rows = max(sub_mult, budget // per_row_pipelined)
    block_rows = min(int(block_rows), _MAX_BLOCK_ROWS)
    block_rows = max(sub_mult, (block_rows // sub_mult) * sub_mult)

    # Either the full row extent (always a legal block) or a sublane-aligned
    # block count with a masked partial last block.
    block_rows_eff = rows if rows <= block_rows else block_rows
    num_blocks = pl.cdiv(rows, block_rows_eff)
    needs_mask = (rows % block_rows_eff) != 0

    kernel = functools.partial(
        _mse_partial_kernel,
        valid_rows=rows,
        block_rows=block_rows_eff,
        needs_mask=needs_mask,
    )

    bytes_in = n_main * (itemsize_p + itemsize_t)
    cost = pl.CostEstimate(
        flops=3 * n_main,  # sub, mul, add per element
        transcendentals=0,
        bytes_accessed=bytes_in + num_blocks * _LANES * 4,
    )

    # Explicit VMEM limit: block choice + 4 MiB headroom, floored at 16 MiB and
    # kept well under physical capacity (64 MiB on v7x, 128 MiB on v5e/v6e).
    block_vmem = 2 * block_rows_eff * _LANES * (itemsize_p + itemsize_t)
    vmem_limit = min(max(block_vmem + (4 << 20), 16 << 20), vmem_cap - (8 << 20))

    partials = pl.pallas_call(
        kernel,
        out_shape=jax.ShapeDtypeStruct((num_blocks, 1, _LANES), jnp.float32),
        grid_spec=pltpu.PrefetchScalarGridSpec(
            num_scalar_prefetch=0,
            grid=(num_blocks,),
            in_specs=[
                pl.BlockSpec((block_rows_eff, _LANES), lambda i: (i, 0)),
                pl.BlockSpec((block_rows_eff, _LANES), lambda i: (i, 0)),
            ],
            out_specs=pl.BlockSpec((1, 1, _LANES), lambda i: (i, 0, 0)),
        ),
        compiler_params=pltpu.CompilerParams(
            dimension_semantics=_dimension_semantics(num_blocks),
            vmem_limit_bytes=int(vmem_limit),
        ),
        cost_estimate=cost,
    )(p2d, t2d)

    # Tiny final reduction + mean in the wrapper.
    total = jnp.sum(partials, dtype=jnp.float32) + tail_sum
    return total / jnp.float32(n)


def _ref_mse(p, t):
    return jnp.mean((p.astype(jnp.float32) - t.astype(jnp.float32)) ** 2)


if __name__ == "__main__":
    key = jax.random.PRNGKey(0)
    kp, kt = jax.random.split(key)

    # NHWC inputs (the PyTorch module permutes to NCHW before the loss, which
    # is a no-op for a full-mean reduction).
    preds = jax.random.normal(kp, (2, 16, 16, 4), dtype=jnp.float32)
    target = jax.random.normal(kt, (2, 16, 16, 4), dtype=jnp.float32)

    loss = mse_loss(preds, target)
    jax.block_until_ready(loss)
    ref = _ref_mse(preds, target)
    assert jnp.allclose(loss, ref, rtol=1e-5, atol=1e-6), (loss, ref)

    # Partial-last-block path (mask only on the last grid step): rows=15,
    # forced block_rows=8 -> 2 blocks, last one masked.
    p2 = jax.random.normal(kp, (2, 15, 16, 4), dtype=jnp.float32)
    t2 = jax.random.normal(kt, (2, 15, 16, 4), dtype=jnp.float32)
    l2 = mse_loss(p2, t2, block_rows=8)
    jax.block_until_ready(l2)
    assert jnp.allclose(l2, _ref_mse(p2, t2), rtol=1e-5, atol=1e-6)

    # Non-multiple-of-128 numel: 128-aligned prefix in the kernel, tail in jnp.
    p3 = jax.random.normal(kp, (3, 7, 5, 3), dtype=jnp.float32)
    t3 = jax.random.normal(kt, (3, 7, 5, 3), dtype=jnp.float32)
    l3 = mse_loss(p3, t3)
    jax.block_until_ready(l3)
    assert jnp.allclose(l3, _ref_mse(p3, t3), rtol=1e-5, atol=1e-6)

    # Tiny input (< 128 elements): pure-tail path, no kernel launch.
    p4 = jax.random.normal(kp, (2, 3, 5, 1), dtype=jnp.float32)
    t4 = jax.random.normal(kt, (2, 3, 5, 1), dtype=jnp.float32)
    l4 = mse_loss(p4, t4)
    jax.block_until_ready(l4)
    assert jnp.allclose(l4, _ref_mse(p4, t4), rtol=1e-5, atol=1e-6)

    # Native low-precision inputs (no wrapper astype; kernel upcasts per tile;
    # block rows rounded to the bf16 packed sublane multiple of 16).
    pb = preds.astype(jnp.bfloat16)
    tb = target.astype(jnp.bfloat16)
    lb = mse_loss(pb, tb)
    jax.block_until_ready(lb)
    assert jnp.allclose(lb, _ref_mse(pb, tb), rtol=1e-5, atol=1e-6)

    print("KERNEL_OK")
</pallas_src>

<mosaic_0001>
module attributes {stable_mosaic.version = 11 : i64} {
  func.func @_mse_partial_kernel(%arg0: i32, %arg1: memref<16x128xf32, #tpu.memory_space<vmem>>, %arg2: memref<16x128xf32, #tpu.memory_space<vmem>>, %arg3: memref<1x1x128xf32, #tpu.memory_space<vmem>>) attributes {dimension_semantics = [#tpu.dimension_semantics<parallel>], iteration_bounds = array<i64: 1>, scalar_prefetch = 0 : i64, scratch_operands = 0 : i64, tpu.core_type = #tpu.core_type<tc>, window_params = [{transform_indices = @transform_0, window_bounds = array<i64: 16, 128>}, {transform_indices = @transform_1, window_bounds = array<i64: 16, 128>}, {transform_indices = @transform_2, window_bounds = array<i64: 1, 1, 128>}]} {
    %c0 = arith.constant 0 : index
    %c0_0 = arith.constant 0 : index
    %0 = vector.load %arg1[%c0, %c0_0] : memref<16x128xf32, #tpu.memory_space<vmem>>, vector<16x128xf32>
    %c0_1 = arith.constant 0 : index
    %c0_2 = arith.constant 0 : index
    %1 = vector.load %arg2[%c0_1, %c0_2] : memref<16x128xf32, #tpu.memory_space<vmem>>, vector<16x128xf32>
    %2 = arith.subf %0, %1 : vector<16x128xf32>
    %3 = arith.mulf %2, %2 : vector<16x128xf32>
    %cst = arith.constant dense<0.000000e+00> : vector<128xf32>
    %4 = vector.multi_reduction <add>, %3, %cst [0] : vector<16x128xf32> to vector<128xf32>
    %5 = vector.shape_cast %4 : vector<128xf32> to vector<1x128xf32>
    %6 = vector.shape_cast %5 : vector<1x128xf32> to vector<1x1x128xf32>
    %c0_3 = arith.constant 0 : index
    %c0_4 = arith.constant 0 : index
    %c0_5 = arith.constant 0 : index
    %7 = vector.load %arg3[%c0_3, %c0_4, %c0_5] : memref<1x1x128xf32, #tpu.memory_space<vmem>>, vector<1x1x128xf32>
    tpu.vector_store %arg3[%c0_3, %c0_4, %c0_5], %6 {strides = array<i32>} : memref<1x1x128xf32, #tpu.memory_space<vmem>>, vector<1x1x128xf32>,
    return
  }
  func.func @transform_0(%arg0: i32) -> (i32, i32) {
    %c0_i32 = arith.constant 0 : i32
    %c0_i32_0 = arith.constant 0 : i32
    return %arg0, %c0_i32 : i32, i32
  }
  func.func @transform_1(%arg0: i32) -> (i32, i32) {
    %c0_i32 = arith.constant 0 : i32
    %c0_i32_0 = arith.constant 0 : i32
    return %arg0, %c0_i32 : i32, i32
  }
  func.func @transform_2(%arg0: i32) -> (i32, i32, i32) {
    %c0_i32 = arith.constant 0 : i32
    %c0_i32_0 = arith.constant 0 : i32
    %c0_i32_1 = arith.constant 0 : i32
    return %arg0, %c0_i32, %c0_i32_0 : i32, i32, i32
  }
}

</mosaic_0001>

<bundles_post_ra>
// kernel: tpu_custom_call.1
= control target key start
LH: loop header
LB: loop body
LE: loop exit
PB: predicated region body
PF: predicated region fallthrough
CT: control target
= control target key end

     0   :  { %7 = vsyncpa [#allocation3], 0  ;;  %s190_s0 = inlined_call_operand.hbm [shape: f32[16,128], index: 0, kind: input, shape index: {}]   ;;  %s191_s1 = inlined_call_operand.hbm [shape: f32[16,128], index: 1, kind: input, shape index: {}]   ;;  %s192_s2 = inlined_call_operand.hbm [shape: f32[1,1,128], index: 2, kind: output, shape index: {}]  }
   0x1   :  { %8 = vsyncpa [#allocation6], 0 }
   0x2   :  { %9 = vsyncpa [#allocation4], 0  ;;  %s14_s11 = sshll.u32 %s190_s0, 4  ;;  %s161_s12 = smov [#allocation2]   ;;  %s15_s11 = int_to_ptr.hbm [resolvable:$true] %s14_s11 }
   0x3   :  { %s16_s13 = sshll.u32 %s161_s12, 4  ;;  %s27_s16 = sshll.u32 %s191_s1, 4  ;;  %s17_s13 = int_to_ptr.vmem [resolvable:$true] %s16_s13  ;;  %s28_s16 = int_to_ptr.hbm [resolvable:$true] %s27_s16 }
   0x4   :  { %s162_s17 = smov 128   ;;  %s163_s18 = smov 8  }
   0x5   :  { %22 = dma.hbm_to_vmem [thread:$0]  %s15_s11, 256, %s17_s13, [#allocation3], %s162_s17, %s162_s17, %s163_s18  }
   0x6   :  { %s164_s19 = smov [#allocation5]  }
   0x7   :  { %s29_s20 = sshll.u32 %s164_s19, 4  ;;  %s30_s20 = int_to_ptr.vmem [resolvable:$true] %s29_s20 }
   0x8   :  { %35 = dma.hbm_to_vmem [thread:$0]  %s28_s16, 256, %s30_s20, [#allocation6], %s162_s17, %s162_s17, %s163_s18  }
   0x9   :  { %155 = dma.done.wait [#allocation3], 256  }
   0xa   :  { %156 = vsyncadd [#allocation3], 4294967040 }
   0xb   :  { %157 = dma.done.wait [#allocation6], 256  }
   0xc   :  { %158 = vsyncadd [#allocation6], 4294967040  ;;  %v44_v0 = vld [vmem:[#allocation2] sm:$0xff]  ;;  %v45_v1 = vld [vmem:[#allocation2 + $0x8] sm:$0xff]  ;;  %s165_s0 = smov [#allocation7]   ;;  %s67_s23 = sshll.u32 %s192_s2, 4  ;;  %s68_s23 = int_to_ptr.hbm [resolvable:$true] %s67_s23 }
   0xd   :  { %v46_v2 = vld [vmem:[#allocation5] sm:$0xff]  ;;  %v47_v3 = vld [vmem:[#allocation5 + $0x8] sm:$0xff]  ;;  %s65_s1 = sshll.u32 %s165_s0, 4  ;;  %s66_s1 = int_to_ptr.vmem [resolvable:$true] %s65_s1 }
   0xe   :  { %v48_v4 = vsub.f32 %v44_v0, %v46_v2  ;;  %v49_v5 = vsub.f32 %v45_v1, %v47_v3 }
  0x10   :  { %v50_v6 = vmul.f32 %v48_v4, %v48_v4  ;;  %v51_v7 = vmul.f32 %v49_v5, %v49_v5 }
  0x12   :  { %v52_v8 = vadd.f32 %v51_v7, %v50_v6 }
  0x14   :  { %v53_v9 = vrot.slane %v52_v8, 4 }
  0x16   :  { %v54_v10 = vadd.f32 %v53_v9, %v52_v8 }
  0x18   :  { %v55_v11 = vrot.slane %v54_v10, 2 }
  0x1a   :  { %v56_v12 = vadd.f32 %v55_v11, %v54_v10 }
  0x1c   :  { %v57_v13 = vrot.slane %v56_v12, 1 }
  0x1e   :  { %v58_v14 = vadd.f32 %v57_v13, %v56_v12 }
  0x20   :  { %59 = vst [vmem:[#allocation7] sm:$0x1] %v58_v14 }
  0x21   :  { %70 = dma.vmem_to_hbm [thread:$0]  %s66_s1, 16, %s68_s23, [#allocation4]  }
  0x22   :  { %159 = dma.done.wait [#allocation4], 16  }
  0x23   :  { %160 = vsyncadd [#allocation4], 4294967280 }
  0x24   :  { %75 = vsyncpa [#allocation3], 1 }
  0x25   :  { %76 = vsyncpa [#allocation6], 1 }
  0x26   :  { %77 = vsyncpa [#allocation4], 1 }

</bundles_post_ra>
